<compile_context>
chip_gen: v6e
topology: v6e:2x2x1
jax: 0.10.0
libtpu: 0.0.40
codegen_flags: <defaults>
</compile_context>

<pallas_src>
import functools

import jax
import jax.numpy as jnp
from jax import lax
from jax.experimental import pallas as pl
from jax.experimental.pallas import tpu as pltpu


def _attention_kernel(xq_ref, xkv_ref, wq_ref, wk_ref, wv_ref, wp_ref,
                      bias_ref, out_ref,
                      q_sc, m_sc, l_sc, o_sc, acc_sc, *,
                      matmul_dtype, exp_dtype):
    """One (batch, head, kv-tile) grid step.

    xq_ref  : (1, N, C)   full sequence (for q of this head)       [matmul_dtype]
    xkv_ref : (1, tk, C)  kv tile of the sequence                  [matmul_dtype]
    wq_ref  : (1, C, hd)  per-head Q weight (scale pre-folded)     [matmul_dtype]
    wk_ref  : (1, C, hd)  per-head K weight                        [matmul_dtype]
    wv_ref  : (1, C, hd)  per-head V weight                        [matmul_dtype]
    wp_ref  : (1, hd, C)  per-head slice of the output projection  [matmul_dtype]
    bias_ref: (1, C)      projection bias                          [f32]
    out_ref : (1, N, C)   output, written once per batch element
    q_sc    : (N, hd)     q for current head
    m_sc/l_sc: (N, 1)     online-softmax running max / sum         [f32]
    o_sc    : (N, hd)     per-head attention-output accumulator    [f32]
    acc_sc  : (N, C)      projection accumulator across heads      [f32]
    """
    h = pl.program_id(1)
    t = pl.program_id(2)
    last_h = pl.num_programs(1) - 1
    last_t = pl.num_programs(2) - 1

    @pl.when((h == 0) & (t == 0))
    def _():
        acc_sc[...] = jnp.zeros_like(acc_sc)

    @pl.when(t == 0)
    def _():
        # q for the whole sequence for this head (softmax scale folded into Wq).
        q_sc[...] = jnp.dot(xq_ref[0], wq_ref[0],
                            preferred_element_type=matmul_dtype)        # (N, hd)
        m_sc[...] = jnp.full_like(m_sc, -jnp.inf)
        l_sc[...] = jnp.zeros_like(l_sc)
        o_sc[...] = jnp.zeros_like(o_sc)

    # K / V for this kv tile (MXU, f32 internal accumulation).
    xk = xkv_ref[0]                                                      # (tk, C)
    k = jnp.dot(xk, wk_ref[0], preferred_element_type=matmul_dtype)     # (tk, hd)
    v = jnp.dot(xk, wv_ref[0], preferred_element_type=matmul_dtype)     # (tk, hd)

    # Scores: contract head_dim of q and k directly (transposed-RHS push,
    # no XLU transpose of the k tile).
    s = lax.dot_general(q_sc[...], k, (((1,), (1,)), ((), ())),
                        preferred_element_type=jnp.float32)              # (N, tk)

    # Online softmax (running stats in f32; exp optionally in bf16 on v6e/v7x).
    m_new = jnp.maximum(m_sc[...], jnp.max(s, axis=-1, keepdims=True))
    alpha = jnp.exp(m_sc[...] - m_new)
    p = jnp.exp((s - m_new).astype(exp_dtype))
    l_sc[...] = alpha * l_sc[...] + jnp.sum(p.astype(jnp.float32), axis=-1,
                                            keepdims=True)
    o_sc[...] = alpha * o_sc[...] + jnp.dot(p.astype(matmul_dtype), v,
                                            preferred_element_type=jnp.float32)
    m_sc[...] = m_new

    @pl.when(t == last_t)
    def _():
        # Finalize this head (exact divide: approx reciprocal can exceed 1e-4)
        # and accumulate its contribution to the fused output projection.
        o_h = o_sc[...] / l_sc[...]                                      # (N, hd)
        acc_sc[...] += jnp.dot(o_h.astype(matmul_dtype), wp_ref[0],
                               preferred_element_type=jnp.float32)       # (N, C)

    @pl.when((h == last_h) & (t == last_t))
    def _():
        # Single lane-dense store per batch element.
        out_ref[0] = (acc_sc[...] + bias_ref[...]).astype(out_ref.dtype)


def _pick_kv_tile(n):
    for cand in (512, 256, 128):
        if n % cand == 0:
            return cand
    return n


def attention_pallas(x, qkv_w, proj_w, proj_b, num_heads, *,
                     matmul_dtype=jnp.bfloat16, exp_dtype=jnp.float32):
    """Pallas multi-head self-attention forward (eval / dropout p=0).

    x      : (B, N, C) float32
    qkv_w  : (3C, C)   float32   (nn.Linear(dim, 3*dim, bias=False).weight)
    proj_w : (C, C)    float32   (nn.Linear(dim, dim).weight)
    proj_b : (C,)      float32   (nn.Linear(dim, dim).bias)
    matmul_dtype: bf16 (MXU-native, default) or f32 (tight tolerance).
    exp_dtype   : f32 default; bf16 recommended on v6e/v7x (EUP-bound softmax).
    """
    B, N, C = x.shape
    hd = C // num_heads
    scale = hd ** (-0.5)

    tk = _pick_kv_tile(N)
    kv_tiles = N // tk

    # --- wrapper-side glue: head-major weights, scale folded, one-time casts ---
    w3 = qkv_w.reshape(3, num_heads, hd, C)                              # (3,H,hd,C)
    wq = (jnp.transpose(w3[0], (0, 2, 1)) * scale).astype(matmul_dtype)  # (H,C,hd)
    wk = jnp.transpose(w3[1], (0, 2, 1)).astype(matmul_dtype)            # (H,C,hd)
    wv = jnp.transpose(w3[2], (0, 2, 1)).astype(matmul_dtype)            # (H,C,hd)
    wp = proj_w.T.reshape(num_heads, hd, C).astype(matmul_dtype)         # (H,hd,C)
    bias = proj_b.reshape(1, C).astype(jnp.float32)
    xm = x.astype(matmul_dtype)

    kernel = functools.partial(_attention_kernel,
                               matmul_dtype=matmul_dtype, exp_dtype=exp_dtype)

    return pl.pallas_call(
        kernel,
        out_shape=jax.ShapeDtypeStruct((B, N, C), x.dtype),
        grid_spec=pltpu.PrefetchScalarGridSpec(
            num_scalar_prefetch=0,
            grid=(B, num_heads, kv_tiles),
            in_specs=[
                pl.BlockSpec((1, N, C), lambda b, h, t: (b, 0, 0)),      # x (full, q)
                pl.BlockSpec((1, tk, C), lambda b, h, t: (b, t, 0)),     # x (kv tile)
                pl.BlockSpec((1, C, hd), lambda b, h, t: (h, 0, 0)),     # Wq[h]
                pl.BlockSpec((1, C, hd), lambda b, h, t: (h, 0, 0)),     # Wk[h]
                pl.BlockSpec((1, C, hd), lambda b, h, t: (h, 0, 0)),     # Wv[h]
                pl.BlockSpec((1, hd, C), lambda b, h, t: (h, 0, 0)),     # Wp[h]
                pl.BlockSpec((1, C), lambda b, h, t: (0, 0)),            # bias
            ],
            out_specs=pl.BlockSpec((1, N, C), lambda b, h, t: (b, 0, 0)),
            scratch_shapes=[
                pltpu.VMEM((N, hd), matmul_dtype),   # q (current head)
                pltpu.VMEM((N, 1), jnp.float32),     # m (running max)
                pltpu.VMEM((N, 1), jnp.float32),     # l (running sum)
                pltpu.VMEM((N, hd), jnp.float32),    # per-head attention out
                pltpu.VMEM((N, C), jnp.float32),     # projection accumulator
            ],
        ),
        compiler_params=pltpu.CompilerParams(
            dimension_semantics=("parallel", "arbitrary", "arbitrary"),
            vmem_limit_bytes=48 * 1024 * 1024,
        ),
    )(xm, xm, wq, wk, wv, wp, bias)


def attention_ref(x, qkv_w, proj_w, proj_b, num_heads):
    """Pure-JAX reference mirroring the PyTorch forward exactly."""
    B, N, C = x.shape
    hd = C // num_heads
    scale = hd ** (-0.5)
    qkv = jnp.einsum("bnc,dc->bnd", x, qkv_w)                 # (B, N, 3C)
    qkv = qkv.reshape(B, N, 3, num_heads, hd).transpose(2, 0, 3, 1, 4)
    q, k, v = qkv[0], qkv[1], qkv[2]                          # (B, H, N, hd)
    attn = jnp.einsum("bhnd,bhmd->bhnm", q, k) * scale
    attn = jax.nn.softmax(attn, axis=-1)
    o = jnp.einsum("bhnm,bhmd->bhnd", attn, v)
    o = o.transpose(0, 2, 1, 3).reshape(B, N, C)
    return o @ proj_w.T + proj_b


if __name__ == "__main__":
    # Small shapes consistent with the module: batch=2, seq=8, dim=32, heads=8
    B, N, C = 2, 8, 32
    num_heads = 8

    key = jax.random.PRNGKey(0)
    kx, kqkv, kpw, kpb = jax.random.split(key, 4)

    x = jax.random.normal(kx, (B, N, C), dtype=jnp.float32)
    qkv_w = 0.02 * jax.random.normal(kqkv, (3 * C, C), dtype=jnp.float32)
    proj_w = 0.02 * jax.random.normal(kpw, (C, C), dtype=jnp.float32)
    proj_b = 0.02 * jax.random.normal(kpb, (C,), dtype=jnp.float32)

    ref = attention_ref(x, qkv_w, proj_w, proj_b, num_heads)

    # f32 matmul path: tight tolerance vs the f32 reference.
    out_f32 = jax.block_until_ready(
        attention_pallas(x, qkv_w, proj_w, proj_b, num_heads,
                         matmul_dtype=jnp.float32))
    assert out_f32.shape == (B, N, C)
    assert jnp.max(jnp.abs(out_f32 - ref)) < 1e-4, "f32 path mismatch vs reference"

    # Default bf16 matmul path (MXU-native on v5e/v6e/v7x): looser tolerance,
    # expected per review ("not a bug").
    out_bf16 = jax.block_until_ready(
        attention_pallas(x, qkv_w, proj_w, proj_b, num_heads))
    assert out_bf16.shape == (B, N, C)
    assert jnp.max(jnp.abs(out_bf16 - ref)) < 2e-2, "bf16 path mismatch vs reference"

    print("KERNEL_OK")
</pallas_src>

<mosaic_0001>
module attributes {stable_mosaic.version = 11 : i64} {
  func.func @_attention_kernel(%arg0: i32, %arg1: i32, %arg2: i32, %arg3: memref<1x8x32xf32, #tpu.memory_space<vmem>>, %arg4: memref<1x8x32xf32, #tpu.memory_space<vmem>>, %arg5: memref<1x32x4xf32, #tpu.memory_space<vmem>>, %arg6: memref<1x32x4xf32, #tpu.memory_space<vmem>>, %arg7: memref<1x32x4xf32, #tpu.memory_space<vmem>>, %arg8: memref<1x4x32xf32, #tpu.memory_space<vmem>>, %arg9: memref<1x32xf32, #tpu.memory_space<vmem>>, %arg10: memref<1x8x32xf32, #tpu.memory_space<vmem>>, %arg11: memref<8x4xf32, #tpu.memory_space<vmem>>, %arg12: memref<8x1xf32, #tpu.memory_space<vmem>>, %arg13: memref<8x1xf32, #tpu.memory_space<vmem>>, %arg14: memref<8x4xf32, #tpu.memory_space<vmem>>, %arg15: memref<8x32xf32, #tpu.memory_space<vmem>>) attributes {dimension_semantics = [#tpu.dimension_semantics<parallel>, #tpu.dimension_semantics<arbitrary>, #tpu.dimension_semantics<arbitrary>], iteration_bounds = array<i64: 2, 8, 1>, scalar_prefetch = 0 : i64, scratch_operands = 5 : i64, tpu.core_type = #tpu.core_type<tc>, window_params = [{transform_indices = @transform_0, window_bounds = array<i64: 1, 8, 32>}, {transform_indices = @transform_1, window_bounds = array<i64: 1, 8, 32>}, {transform_indices = @transform_2, window_bounds = array<i64: 1, 32, 4>}, {transform_indices = @transform_3, window_bounds = array<i64: 1, 32, 4>}, {transform_indices = @transform_4, window_bounds = array<i64: 1, 32, 4>}, {transform_indices = @transform_5, window_bounds = array<i64: 1, 4, 32>}, {pipeline_mode = #tpu.pipeline_mode<synchronous>, transform_indices = @transform_6, window_bounds = array<i64: 1, 32>}, {transform_indices = @transform_7, window_bounds = array<i64: 1, 8, 32>}]} {
    %c0_i32 = arith.constant 0 : i32
    %0 = arith.cmpi eq, %arg1, %c0_i32 : i32
    %c0_i32_0 = arith.constant 0 : i32
    %1 = arith.cmpi eq, %arg2, %c0_i32_0 : i32
    %2 = arith.andi %0, %1 : i1
    %3 = arith.extui %2 : i1 to i32
    %c0_i32_1 = arith.constant 0 : i32
    %4 = arith.cmpi ne, %3, %c0_i32_1 : i32
    scf.if %4 {
      %cst_37 = arith.constant 0.000000e+00 : f32
      %49 = vector.broadcast %cst_37 : f32 to vector<8x32xf32>
      %c0_38 = arith.constant 0 : index
      %c0_39 = arith.constant 0 : index
      %50 = vector.load %arg15[%c0_38, %c0_39] : memref<8x32xf32, #tpu.memory_space<vmem>>, vector<8x32xf32>
      tpu.vector_store %arg15[%c0_38, %c0_39], %49 {strides = array<i32>} : memref<8x32xf32, #tpu.memory_space<vmem>>, vector<8x32xf32>,
    } else {
    }
    %c0_i32_2 = arith.constant 0 : i32
    %5 = arith.cmpi eq, %arg2, %c0_i32_2 : i32
    %6 = arith.extui %5 : i1 to i32
    %c0_i32_3 = arith.constant 0 : i32
    %7 = arith.cmpi ne, %6, %c0_i32_3 : i32
    scf.if %7 {
      %c0_37 = arith.constant 0 : index
      %c0_38 = arith.constant 0 : index
      %c0_39 = arith.constant 0 : index
      %49 = vector.load %arg3[%c0_37, %c0_38, %c0_39] : memref<1x8x32xf32, #tpu.memory_space<vmem>>, vector<1x8x32xf32>
      %50 = vector.shape_cast %49 : vector<1x8x32xf32> to vector<8x32xf32>
      %c0_40 = arith.constant 0 : index
      %c0_41 = arith.constant 0 : index
      %c0_42 = arith.constant 0 : index
      %51 = vector.load %arg5[%c0_40, %c0_41, %c0_42] : memref<1x32x4xf32, #tpu.memory_space<vmem>>, vector<1x32x4xf32>
      %52 = vector.shape_cast %51 : vector<1x32x4xf32> to vector<32x4xf32>
      %cst_43 = arith.constant dense<0.000000e+00> : vector<8x4xf32>
      %53 = tpu.matmul %50, %52, %cst_43 {dimension_numbers = #tpu.dot_dimension_numbers<[1], [0], [0], [1], [0, 0, 1, 1], [], []>} : vector<8x32xf32>, vector<32x4xf32>, vector<8x4xf32> -> vector<8x4xf32>
      %c0_44 = arith.constant 0 : index
      %c0_45 = arith.constant 0 : index
      %54 = vector.load %arg11[%c0_44, %c0_45] : memref<8x4xf32, #tpu.memory_space<vmem>>, vector<8x4xf32>
      tpu.vector_store %arg11[%c0_44, %c0_45], %53 {strides = array<i32>} : memref<8x4xf32, #tpu.memory_space<vmem>>, vector<8x4xf32>,
      %cst_46 = arith.constant 0xFF800000 : f32
      %55 = vector.broadcast %cst_46 : f32 to vector<8x1xf32>
      %c0_47 = arith.constant 0 : index
      %c0_48 = arith.constant 0 : index
      %56 = vector.load %arg12[%c0_47, %c0_48] : memref<8x1xf32, #tpu.memory_space<vmem>>, vector<8x1xf32>
      tpu.vector_store %arg12[%c0_47, %c0_48], %55 {strides = array<i32>} : memref<8x1xf32, #tpu.memory_space<vmem>>, vector<8x1xf32>,
      %cst_49 = arith.constant 0.000000e+00 : f32
      %57 = vector.broadcast %cst_49 : f32 to vector<8x1xf32>
      %c0_50 = arith.constant 0 : index
      %c0_51 = arith.constant 0 : index
      %58 = vector.load %arg13[%c0_50, %c0_51] : memref<8x1xf32, #tpu.memory_space<vmem>>, vector<8x1xf32>
      tpu.vector_store %arg13[%c0_50, %c0_51], %57 {strides = array<i32>} : memref<8x1xf32, #tpu.memory_space<vmem>>, vector<8x1xf32>,
      %cst_52 = arith.constant 0.000000e+00 : f32
      %59 = vector.broadcast %cst_52 : f32 to vector<8x4xf32>
      %c0_53 = arith.constant 0 : index
      %c0_54 = arith.constant 0 : index
      %60 = vector.load %arg14[%c0_53, %c0_54] : memref<8x4xf32, #tpu.memory_space<vmem>>, vector<8x4xf32>
      tpu.vector_store %arg14[%c0_53, %c0_54], %59 {strides = array<i32>} : memref<8x4xf32, #tpu.memory_space<vmem>>, vector<8x4xf32>,
    } else {
    }
    %c0 = arith.constant 0 : index
    %c0_4 = arith.constant 0 : index
    %c0_5 = arith.constant 0 : index
    %8 = vector.load %arg4[%c0, %c0_4, %c0_5] : memref<1x8x32xf32, #tpu.memory_space<vmem>>, vector<1x8x32xf32>
    %9 = vector.shape_cast %8 : vector<1x8x32xf32> to vector<8x32xf32>
    %c0_6 = arith.constant 0 : index
    %c0_7 = arith.constant 0 : index
    %c0_8 = arith.constant 0 : index
    %10 = vector.load %arg6[%c0_6, %c0_7, %c0_8] : memref<1x32x4xf32, #tpu.memory_space<vmem>>, vector<1x32x4xf32>
    %11 = vector.shape_cast %10 : vector<1x32x4xf32> to vector<32x4xf32>
    %cst = arith.constant dense<0.000000e+00> : vector<8x4xf32>
    %12 = tpu.matmul %9, %11, %cst {dimension_numbers = #tpu.dot_dimension_numbers<[1], [0], [0], [1], [0, 0, 1, 1], [], []>} : vector<8x32xf32>, vector<32x4xf32>, vector<8x4xf32> -> vector<8x4xf32>
    %c0_9 = arith.constant 0 : index
    %c0_10 = arith.constant 0 : index
    %c0_11 = arith.constant 0 : index
    %13 = vector.load %arg7[%c0_9, %c0_10, %c0_11] : memref<1x32x4xf32, #tpu.memory_space<vmem>>, vector<1x32x4xf32>
    %14 = vector.shape_cast %13 : vector<1x32x4xf32> to vector<32x4xf32>
    %cst_12 = arith.constant dense<0.000000e+00> : vector<8x4xf32>
    %15 = tpu.matmul %9, %14, %cst_12 {dimension_numbers = #tpu.dot_dimension_numbers<[1], [0], [0], [1], [0, 0, 1, 1], [], []>} : vector<8x32xf32>, vector<32x4xf32>, vector<8x4xf32> -> vector<8x4xf32>
    %c0_13 = arith.constant 0 : index
    %c0_14 = arith.constant 0 : index
    %16 = vector.load %arg11[%c0_13, %c0_14] : memref<8x4xf32, #tpu.memory_space<vmem>>, vector<8x4xf32>
    %cst_15 = arith.constant dense<0.000000e+00> : vector<8x8xf32>
    %17 = tpu.matmul %16, %12, %cst_15 {dimension_numbers = #tpu.dot_dimension_numbers<[1], [1], [0], [0], [0, 0, 1, 0], [], []>} : vector<8x4xf32>, vector<8x4xf32>, vector<8x8xf32> -> vector<8x8xf32>
    %c0_16 = arith.constant 0 : index
    %c0_17 = arith.constant 0 : index
    %18 = vector.load %arg12[%c0_16, %c0_17] : memref<8x1xf32, #tpu.memory_space<vmem>>, vector<8x1xf32>
    %cst_18 = arith.constant dense<0xFF800000> : vector<8xf32>
    %19 = vector.multi_reduction <maximumf>, %17, %cst_18 [1] : vector<8x8xf32> to vector<8xf32>
    %20 = vector.shape_cast %19 : vector<8xf32> to vector<8x1xf32>
    %21 = arith.maximumf %18, %20 : vector<8x1xf32>
    %c0_19 = arith.constant 0 : index
    %c0_20 = arith.constant 0 : index
    %22 = vector.load %arg12[%c0_19, %c0_20] : memref<8x1xf32, #tpu.memory_space<vmem>>, vector<8x1xf32>
    %23 = arith.subf %22, %21 : vector<8x1xf32>
    %24 = math.exp %23 : vector<8x1xf32>
    %25 = vector.broadcast %21 : vector<8x1xf32> to vector<8x8xf32>
    %26 = arith.subf %17, %25 : vector<8x8xf32>
    %27 = math.exp %26 : vector<8x8xf32>
    %c0_21 = arith.constant 0 : index
    %c0_22 = arith.constant 0 : index
    %28 = vector.load %arg13[%c0_21, %c0_22] : memref<8x1xf32, #tpu.memory_space<vmem>>, vector<8x1xf32>
    %29 = arith.mulf %24, %28 : vector<8x1xf32>
    %cst_23 = arith.constant dense<0.000000e+00> : vector<8xf32>
    %30 = vector.multi_reduction <add>, %27, %cst_23 [1] : vector<8x8xf32> to vector<8xf32>
    %31 = vector.shape_cast %30 : vector<8xf32> to vector<8x1xf32>
    %32 = arith.addf %29, %31 : vector<8x1xf32>
    %c0_24 = arith.constant 0 : index
    %c0_25 = arith.constant 0 : index
    %33 = vector.load %arg13[%c0_24, %c0_25] : memref<8x1xf32, #tpu.memory_space<vmem>>, vector<8x1xf32>
    tpu.vector_store %arg13[%c0_24, %c0_25], %32 {strides = array<i32>} : memref<8x1xf32, #tpu.memory_space<vmem>>, vector<8x1xf32>,
    %c0_26 = arith.constant 0 : index
    %c0_27 = arith.constant 0 : index
    %34 = vector.load %arg14[%c0_26, %c0_27] : memref<8x4xf32, #tpu.memory_space<vmem>>, vector<8x4xf32>
    %35 = vector.broadcast %24 : vector<8x1xf32> to vector<8x4xf32>
    %36 = arith.mulf %35, %34 : vector<8x4xf32>
    %cst_28 = arith.constant dense<0.000000e+00> : vector<8x4xf32>
    %37 = tpu.matmul %27, %15, %cst_28 {dimension_numbers = #tpu.dot_dimension_numbers<[1], [0], [0], [1], [0, 0, 1, 1], [], []>} : vector<8x8xf32>, vector<8x4xf32>, vector<8x4xf32> -> vector<8x4xf32>
    %38 = arith.addf %36, %37 : vector<8x4xf32>
    %c0_29 = arith.constant 0 : index
    %c0_30 = arith.constant 0 : index
    %39 = vector.load %arg14[%c0_29, %c0_30] : memref<8x4xf32, #tpu.memory_space<vmem>>, vector<8x4xf32>
    tpu.vector_store %arg14[%c0_29, %c0_30], %38 {strides = array<i32>} : memref<8x4xf32, #tpu.memory_space<vmem>>, vector<8x4xf32>,
    %c0_31 = arith.constant 0 : index
    %c0_32 = arith.constant 0 : index
    %40 = vector.load %arg12[%c0_31, %c0_32] : memref<8x1xf32, #tpu.memory_space<vmem>>, vector<8x1xf32>
    tpu.vector_store %arg12[%c0_31, %c0_32], %21 {strides = array<i32>} : memref<8x1xf32, #tpu.memory_space<vmem>>, vector<8x1xf32>,
    %c0_i32_33 = arith.constant 0 : i32
    %41 = arith.cmpi eq, %arg2, %c0_i32_33 : i32
    %42 = arith.extui %41 : i1 to i32
    %c0_i32_34 = arith.constant 0 : i32
    %43 = arith.cmpi ne, %42, %c0_i32_34 : i32
    scf.if %43 {
      %c0_37 = arith.constant 0 : index
      %c0_38 = arith.constant 0 : index
      %49 = vector.load %arg14[%c0_37, %c0_38] : memref<8x4xf32, #tpu.memory_space<vmem>>, vector<8x4xf32>
      %c0_39 = arith.constant 0 : index
      %c0_40 = arith.constant 0 : index
      %50 = vector.load %arg13[%c0_39, %c0_40] : memref<8x1xf32, #tpu.memory_space<vmem>>, vector<8x1xf32>
      %51 = vector.broadcast %50 : vector<8x1xf32> to vector<8x4xf32>
      %52 = arith.divf %49, %51 : vector<8x4xf32>
      %c0_41 = arith.constant 0 : index
      %c0_42 = arith.constant 0 : index
      %53 = vector.load %arg15[%c0_41, %c0_42] : memref<8x32xf32, #tpu.memory_space<vmem>>, vector<8x32xf32>
      %c0_43 = arith.constant 0 : index
      %c0_44 = arith.constant 0 : index
      %c0_45 = arith.constant 0 : index
      %54 = vector.load %arg8[%c0_43, %c0_44, %c0_45] : memref<1x4x32xf32, #tpu.memory_space<vmem>>, vector<1x4x32xf32>
      %55 = vector.shape_cast %54 : vector<1x4x32xf32> to vector<4x32xf32>
      %cst_46 = arith.constant dense<0.000000e+00> : vector<8x32xf32>
      %56 = tpu.matmul %52, %55, %cst_46 {dimension_numbers = #tpu.dot_dimension_numbers<[1], [0], [0], [1], [0, 0, 1, 1], [], []>} : vector<8x4xf32>, vector<4x32xf32>, vector<8x32xf32> -> vector<8x32xf32>
      %57 = arith.addf %53, %56 : vector<8x32xf32>
      %c0_47 = arith.constant 0 : index
      %c0_48 = arith.constant 0 : index
      %58 = vector.load %arg15[%c0_47, %c0_48] : memref<8x32xf32, #tpu.memory_space<vmem>>, vector<8x32xf32>
      tpu.vector_store %arg15[%c0_47, %c0_48], %57 {strides = array<i32>} : memref<8x32xf32, #tpu.memory_space<vmem>>, vector<8x32xf32>,
    } else {
    }
    %c7_i32 = arith.constant 7 : i32
    %44 = arith.cmpi eq, %arg1, %c7_i32 : i32
    %c0_i32_35 = arith.constant 0 : i32
    %45 = arith.cmpi eq, %arg2, %c0_i32_35 : i32
    %46 = arith.andi %44, %45 : i1
    %47 = arith.extui %46 : i1 to i32
    %c0_i32_36 = arith.constant 0 : i32
    %48 = arith.cmpi ne, %47, %c0_i32_36 : i32
    scf.if %48 {
      %c0_37 = arith.constant 0 : index
      %c0_38 = arith.constant 0 : index
      %49 = vector.load %arg15[%c0_37, %c0_38] : memref<8x32xf32, #tpu.memory_space<vmem>>, vector<8x32xf32>
      %c0_39 = arith.constant 0 : index
      %c0_40 = arith.constant 0 : index
      %50 = vector.load %arg9[%c0_39, %c0_40] : memref<1x32xf32, #tpu.memory_space<vmem>>, vector<1x32xf32>
      %51 = vector.broadcast %50 : vector<1x32xf32> to vector<8x32xf32>
      %52 = arith.addf %49, %51 : vector<8x32xf32>
      %c0_41 = arith.constant 0 : index
      %c0_42 = arith.constant 0 : index
      %c0_43 = arith.constant 0 : index
      %53 = vector.load %arg10[%c0_41, %c0_42, %c0_43] : memref<1x8x32xf32, #tpu.memory_space<vmem>>, vector<1x8x32xf32>
      %54 = vector.shape_cast %53 : vector<1x8x32xf32> to vector<8x32xf32>
      %55 = vector.shape_cast %52 : vector<8x32xf32> to vector<1x8x32xf32>
      tpu.vector_store %arg10[%c0_41, %c0_42, %c0_43], %55 {strides = array<i32>} : memref<1x8x32xf32, #tpu.memory_space<vmem>>, vector<1x8x32xf32>,
    } else {
    }
    return
  }
  func.func @transform_0(%arg0: i32, %arg1: i32, %arg2: i32) -> (i32, i32, i32) {
    %c0_i32 = arith.constant 0 : i32
    %c0_i32_0 = arith.constant 0 : i32
    %c0_i32_1 = arith.constant 0 : i32
    return %arg0, %c0_i32, %c0_i32_0 : i32, i32, i32
  }
  func.func @transform_1(%arg0: i32, %arg1: i32, %arg2: i32) -> (i32, i32, i32) {
    %c0_i32 = arith.constant 0 : i32
    %c0_i32_0 = arith.constant 0 : i32
    return %arg0, %arg2, %c0_i32 : i32, i32, i32
  }
  func.func @transform_2(%arg0: i32, %arg1: i32, %arg2: i32) -> (i32, i32, i32) {
    %c0_i32 = arith.constant 0 : i32
    %c0_i32_0 = arith.constant 0 : i32
    %c0_i32_1 = arith.constant 0 : i32
    return %arg1, %c0_i32, %c0_i32_0 : i32, i32, i32
  }
  func.func @transform_3(%arg0: i32, %arg1: i32, %arg2: i32) -> (i32, i32, i32) {
    %c0_i32 = arith.constant 0 : i32
    %c0_i32_0 = arith.constant 0 : i32
    %c0_i32_1 = arith.constant 0 : i32
    return %arg1, %c0_i32, %c0_i32_0 : i32, i32, i32
  }
  func.func @transform_4(%arg0: i32, %arg1: i32, %arg2: i32) -> (i32, i32, i32) {
    %c0_i32 = arith.constant 0 : i32
    %c0_i32_0 = arith.constant 0 : i32
    %c0_i32_1 = arith.constant 0 : i32
    return %arg1, %c0_i32, %c0_i32_0 : i32, i32, i32
  }
  func.func @transform_5(%arg0: i32, %arg1: i32, %arg2: i32) -> (i32, i32, i32) {
    %c0_i32 = arith.constant 0 : i32
    %c0_i32_0 = arith.constant 0 : i32
    %c0_i32_1 = arith.constant 0 : i32
    return %arg1, %c0_i32, %c0_i32_0 : i32, i32, i32
  }
  func.func @transform_6(%arg0: i32, %arg1: i32, %arg2: i32) -> (i32, i32) {
    %c0_i32 = arith.constant 0 : i32
    %c0_i32_0 = arith.constant 0 : i32
    %c0_i32_1 = arith.constant 0 : i32
    return %c0_i32, %c0_i32_0 : i32, i32
  }
  func.func @transform_7(%arg0: i32, %arg1: i32, %arg2: i32) -> (i32, i32, i32) {
    %c0_i32 = arith.constant 0 : i32
    %c0_i32_0 = arith.constant 0 : i32
    %c0_i32_1 = arith.constant 0 : i32
    return %arg0, %c0_i32, %c0_i32_0 : i32, i32, i32
  }
}

</mosaic_0001>

<bundles_post_ra>
// kernel: tpu_custom_call.1
= control target key start
LH: loop header
LB: loop body
LE: loop exit
PB: predicated region body
PF: predicated region fallthrough
CT: control target
= control target key end

     0   :  { %s1639_s0 = inlined_call_operand.vmem [shape: f32[2,8,32], index: 0, kind: input, shape index: {}]   ;;  %s1640_s1 = inlined_call_operand.vmem [shape: f32[2,8,32], index: 1, kind: input, shape index: {}]   ;;  %s1641_s2 = inlined_call_operand.vmem [shape: f32[8,32,4], index: 2, kind: input, shape index: {}]   ;;  %s1642_s3 = inlined_call_operand.vmem [shape: f32[8,32,4], index: 3, kind: input, shape index: {}]   ;;  %s1643_s4 = inlined_call_operand.vmem [shape: f32[8,32,4], index: 4, kind: input, shape index: {}]   ;;  %s1644_s5 = inlined_call_operand.vmem [shape: f32[8,4,32], index: 5, kind: input, shape index: {}]   ;;  %s1645_s6 = inlined_call_operand.vmem [shape: f32[1,32], index: 6, kind: input, shape index: {}]   ;;  %s1646_s7 = inlined_call_operand.hbm [shape: f32[2,8,32], index: 7, kind: output, shape index: {}]  }
   0x1   :  { %1654 = sst [smem:[#allocation18_spill]] %s1639_s0 }
   0x2   :  { %12 = vsyncpa [#allocation8], 0 }
   0x3   :  { %14 = vsyncpa [#allocation8 + $0x1], 0  ;;  %s1419_s24 = smov 0   ;;  %s1421_s25 = smov 0  }
   0x4   :  { %s1423_s26 = smov 0   ;;  %s1425_s27 = smov 0  }
   0x5   :  { %s1427_s28 = smov 0   ;;  %s1429_s29 = smov 0  }
   0x6   :  { %s1431_s30 = smov 0   ;;  %s1433_s8 = smov 0  }
   0x7 LB: > { %1655 = sst [smem:[#allocation10_spill]] %s1343_s24  ;;  %s1091_s9 = sadd.s32 4294967295, %s1371_s8   ;;  %s1371_s8 = sphi %s1433_s8, %s20_s8   ;;  %s1367_s30 = sphi %s1431_s30, %s1674_s30   ;;  %s1363_s29 = sphi %s1429_s29, %s1673_s29   ;;  %s1359_s28 = sphi %s1427_s28, %s1672_s28   ;;  %s1355_s27 = sphi %s1425_s27, %s1678_s27   ;;  %s1351_s26 = sphi %s1423_s26, %s1677_s26   ;;  %s1347_s25 = sphi %s1421_s25, %s1676_s25   ;;  %s1343_s24 = sphi %s1419_s24, %s1675_s24  }
   0x8   : > { %1656 = sst [smem:[#allocation11_spill]] %s1351_s26  ;;  %s1092_s10 = sadd.s32 4294967294, %s1371_s8  }
   0x9   : > { %1657 = sst [smem:[#allocation12_spill]] %s1363_s29  ;;  %s35_s11 = sadd.s32 1, %s1363_s29 }
   0xa   : > { %1658 = sst [smem:[#allocation13_spill]] %s1367_s30  ;;  %p37_p0 = scmp.ge.s32.totalorder %s35_s11, 8 }
   0xb   : > { %s39_s12 = sadd.s32 1, %s1367_s30  ;;  %p235_p1 = scmp.ne.s32.totalorder %s1351_s26, %s1347_s25 }
   0xc   : > { %p236_p2 = scmp.eq.s32.totalorder %s1091_s9, 15  ;;  %s1680_s11 = smov (%p37_p0, %s35_s11), 0 }
   0xd   : > { %1659 = sst [smem:[#allocation14_spill]] %s1680_s11  ;;  %s1682_s12 = smov (!%p37_p0, %s39_s12), %s1367_s30 }
   0xe   : > { %p1468_p3 = por %p236_p2, %p235_p1  ;;  %p241_p4 = scmp.ne.s32.totalorder %s1347_s25, %s1343_s24 }
   0xf   : > { %p41_p5 = scmp.ge.s32.totalorder %s1682_s12, 2  ;;  %p242_p6 = scmp.eq.s32.totalorder %s1092_s10, 15 }
  0x10   : > { %p1095_p7 = scmp.ge.s32.totalorder %s1371_s8, 1  ;;  %p311_p8 = scmp.lt.s32.totalorder %s1371_s8, 17 }
  0x11   : > { %s1684_s12 = smov (%p41_p5, %s1682_s12), 0  ;;  %p1478_p9 = por %p242_p6, %p241_p4 }
  0x12   : > { %1661 = sst [smem:[#allocation15_spill]] %s1684_s12  ;;  %p312_p10 = pnand %p1095_p7, %p311_p8 }
  0x13   : > { %s1662_s14 = scalar_select %p1478_p9, 1, 0 }
  0x14   : > { %s222_s15 = ssub.s32 %s1367_s30, %s1684_s12  ;;  %s225_s16 = sadd.s32 1, %s1351_s26 }
  0x15   : > { %1663 = sst [smem:[#allocation16_spill]] %s1662_s14  ;;  %p223_p11 = scmp.eq.s32.totalorder %s222_s15, 0 }
  0x16   : > { %315 = sbr.rel (%p312_p10) target bundleno = 1246 (0x4de), region = 48  ;;  %s1649_s18 = sand.u32 (!%p312_p10), 1, %s1347_s25  }
  0x17   : > { %s1486_s17 = scalar_select %p223_p11, %s1351_s26, %s225_s16  }
  0x18   : > { %p368_p12 = scmp.lt.s32.totalorder (!%p312_p10), %s1359_s28, 1  ;;  %s1492_s19 = sshll.u32 (!%p312_p10), %s1649_s18, 3 }
  0x19   : > { %1664 = sst [smem:[#allocation17_spill]] %s1486_s17  ;;  %p379_p13 = scmp.lt.s32.totalorder (!%p312_p10), %s1355_s27, 7 }
  0x1a   : > { %p398_p0 = scmp.eq.s32.totalorder (!%p312_p10), %s1355_s27, 0  ;;  %s1665_s0 = sld [smem:[#allocation18_spill]] (!%p312_p10) }
  0x1b   : > { %s369_s20 = scalar_select %p368_p12, %s1359_s28, 1  ;;  %vm404_vm0 = vcmask (%p398_p0), 261120   ;;  %v1373_v0 = vmov (%p398_p0), 0.0  }
  0x1c   : > { %s380_s21 = scalar_select %p379_p13, %s1355_s27, 7  ;;  %405 = vst.msk [vmem:[#allocation6] sm:$0xff] (%p398_p0), %vm404_vm0, %v1373_v0 }
  0x1d   : > { %s1097_s22 = sshll.u32 %s369_s20, 3 }
  0x1e   : > { %s1506_s12 = scalar_lea.vmem %s1640_s1, %s1097_s22  ;;  %s1121_s11 = sshll.u32 %s380_s21, 5 }
  0x1f   : > { %s1105_s30 = sshll.u32 %s380_s21, 2  ;;  %s383_s17 = scalar_lea.vmem %s1641_s2, %s1121_s11 }
  0x20   : > { %s1501_s10 = scalar_lea.vmem %s1665_s0, %s1097_s22  ;;  %s1514_s20 = scalar_lea.vmem %s1642_s3, %s1121_s11 }
  0x21   : > { %s1519_s9 = scalar_lea.vmem %s1643_s4, %s1121_s11  ;;  %s1524_s22 = scalar_lea.vmem %s1644_s5, %s1105_s30 }
  0x22   : > { %s367_s21 = scalar_lea.vmem [#allocation7], %s1492_s19  ;;  %403 = sbr.rel (!%p398_p0) target bundleno = 39 (0x27), region = 52 }
  0x27 PF: > { %v413_v1 = vld [vmem:[%s383_s17 + $0x18] sm:$0xff]  ;;  %v1374_v3 = vmov 0.0   ;;  %v412_v4 = vld [vmem:[%s383_s17 + $0x10] sm:$0xff]  ;;  %v411_v6 = vld [vmem:[%s383_s17 + $0x8] sm:$0xff]  ;;  %vm1375_vm1 = vmmov 0   ;;  %vm414_vm2 = vcmask 261120  }
  0x28   : > { %v498_v2 = vld [vmem:[%s1514_s20 + $0x18] sm:$0xff]  ;;  %1147 = vmatprep.subr.mxu0 %v1374_v3  ;;  %1158 = vmatprep.subr.mxu1 %v1374_v3  ;;  %v497_v5 = vld [vmem:[%s1514_s20 + $0x10] sm:$0xff]  ;;  %v496_v7 = vld [vmem:[%s1514_s20 + $0x8] sm:$0xff]  ;;  %vm488_vm3 = vcmask 31744   ;;  %vm490_vm4 = vcmask 7168   ;;  %v1376_v19 = vmov -inf  }
  0x29   : > { %1148 = vmatpush3.msra.mxu0 %v413_v1  ;;  %1159 = vmatpush3.msra.mxu1 %v498_v2  ;;  %v410_v8 = vld [vmem:[%s383_s17] sm:$0xff]  ;;  %493 = vst.msk [vmem:[#allocation5] sm:$0xff] %vm488_vm3, %v1374_v3  ;;  %v576_v17 = vld [vmem:[%s1519_s9 + $0x18] sm:$0xff]  ;;  %v575_v18 = vld [vmem:[%s1519_s9 + $0x10] sm:$0xff]  ;;  %vm726_vm5 = vcmask 64512   ;;  %v1377_v25 = vmov 0  }
  0x2a   : > { %1149 = vmatprep.subr.mxu0 %v1374_v3  ;;  %1160 = vmatprep.subr.mxu1 %v1374_v3  ;;  %v409_v9 = vld [vmem:[%s1501_s10] sm:$0xff]  ;;  %491 = vst.msk [vmem:[#allocation3] sm:$0xff] %vm490_vm4, %v1376_v19  ;;  %492 = vst.msk [vmem:[#allocation4] sm:$0xff] %vm490_vm4, %v1374_v3  ;;  %v574_v20 = vld [vmem:[%s1519_s9 + $0x8] sm:$0xff]  ;;  %vm850_vm6 = vcmask 1043456   ;;  %p926_p1 = scmp.eq.s32.totalorder %s1355_s27, 7 }
  0x2b   : > { %1150 = vmatpush3.msra.mxu0 %v412_v4  ;;  %1161 = vmatpush3.msra.mxu1 %v497_v5  ;;  %v495_v10 = vld [vmem:[%s1514_s20] sm:$0xff] }
  0x2c   : > { %1151 = vmatprep.subr.mxu0 %v1374_v3  ;;  %1162 = vmatprep.subr.mxu1 %v1374_v3  ;;  %v494_v11 = vld [vmem:[%s1506_s12] sm:$0xff] }
  0x2d   : > { %1152 = vmatpush3.msra.mxu0 %v411_v6  ;;  %1155 = vmatprep.mubr.msk.f32.mxu0 %vm1375_vm1, %v1374_v3  ;;  %v573_v21 = vld [vmem:[%s1519_s9] sm:$0xff] }
  0x2e   : > { %1153 = vmatprep.subr.mxu0 %v1374_v3  ;;  %1163 = vmatpush3.msra.mxu1 %v496_v7  ;;  %v846_v44 = vld [vmem:[%s1524_s22] sm:$0xf] }
  0x2f   : > { %1154 = vmatpush3.msra.mxu0 %v410_v8  ;;  %1164 = vmatprep.subr.mxu1 %v1374_v3  ;;  %v845_v55 = vld [vmem:[#allocation6] sm:$0xff] }
  0x30   : > { %1156 = vmatmul.mubr.msk.f32.vlgmr.msra.gmra.mxu0 %vm414_vm2, %v409_v9  ;;  %1165 = vmatpush3.msra.mxu1 %v495_v10  ;;  %v750_v48 = vld [vmem:[#allocation5] sm:$0xff]  ;;  %v1116_v60 = vld [vmem:[%s1645_s6] ss:$0 sm:$0xff] (%p926_p1) }
  0x31   : > { %1166 = vmatprep.mubr.msk.f32.mxu1 %vm1375_vm1, %v1374_v3  ;;  %1180 = vmatprep.subr.mxu1 %v1374_v3  ;;  %v725_v26 = vld [vmem:[#allocation3] sm:$0xff]  ;;  %v742_v39 = vld [vmem:[#allocation4] sm:$0xff] }
  0x32   : > { %1167 = vmatmul.mubr.msk.f32.vlgmr.msra.gmra.mxu1 %vm414_vm2, %v494_v11  ;;  %1169 = vmatprep.subr.mxu0 %v1374_v3 }
  0x33   : > { %1182 = vmatprep.mubr.msk.f32.mxu1 %vm1375_vm1, %v1374_v3  ;;  %1177 = vmatprep.mubr.msk.f32.mxu0 %vm1375_vm1, %v1374_v3 }
  0x34   : > { %1170 = vmatpush3.msra.mxu0 %v576_v17  ;;  %1271 = vset.pattern.permute.xlu0 %v1377_v25 }
  0x35   : > { %1171 = vmatprep.subr.mxu0 %v1374_v3  ;;  %1272 = vset.pattern.permute.xlu1 %v1377_v25 }
  0x36   : > { %1172 = vmatpush3.msra.mxu0 %v575_v18 }
  0x37   : > { %1173 = vmatprep.subr.mxu0 %v1374_v3 }
  0x38   : > { %1174 = vmatpush3.msra.mxu0 %v574_v20 }
  0x39   : > { %1175 = vmatprep.subr.mxu0 %v1374_v3 }
  0x3a   : > { %1176 = vmatpush3.msra.mxu0 %v573_v21 }
  0x3b   : > { %1178 = vmatmul.mubr.msk.f32.vlgmr.msra.gmra.mxu0 %vm414_vm2, %v494_v11  ;;  %1190 = vmatprep.subr.mxu0 %v1374_v3 }
  0x3c   : > { %1192 = vmatprep.mubr.msk.f32.mxu0 %vm1375_vm1, %v1374_v3  ;;  %1191 = vmatpush3.msk.msra.mxu0 %vm850_vm6, %v846_v44 }
  0xf0   : > { %v484_v12 = vpop.f32.mrf.mxu0 }
  0xf1   : > { %489 = vst.msk [vmem:[#allocation2] sm:$0xff] %vm488_vm3, %v484_v12 }
  0xf2   : > { %v1157_v13 = vpop.f32.mrf.mxu0  ;;  %v569_v14 = vpop.f32.mrf.mxu1 }
  0xf3   : > { %1181 = vmatpush3.xpose.msk.msra.mxu1 %vm488_vm3, %v569_v14 }
  0xf4   : > { %v1168_v15 = vpop.f32.mrf.mxu1  ;;  %1185 = vmatprep.subr.mxu1 %v1374_v3 }
  0xf8   : > { %v647_v16 = vld [vmem:[#allocation2] sm:$0xff] }
  0xf9   : > { %1183 = vmatmul.mubr.msk.f32.vlgmr.msra.gmra.mxu1 %vm488_vm3, %v647_v16 }
  0xfa   : > { %1187 = vmatprep.mubr.msk.f32.mxu1 %vm1375_vm1, %v1374_v3 }
  0xfb   : > { %v643_v30 = vpop.f32.mrf.mxu0 }
  0xfc   : > { %1186 = vmatpush3.msra.mxu1 %v643_v30 }
  0xfd   : > { %v1179_v31 = vpop.f32.mrf.mxu0 }
 0x1b9   : > { %v721_v22 = vpop.f32.mrf.mxu1 }
 0x1ba   : > { %v727_v23 = vsel %vm726_vm5, %v721_v22, -inf }
 0x1bb   : > { %728 = vmax.xlane.f32.xlu0 %v727_v23  ;;  %v1184_v24 = vpop.f32.mrf.mxu1 }
 0x244   : > { %v729_v27 = vpop.xlane.xlu0 %728 }
 0x245   : > { %v730_v28 = vmax.f32 %v725_v26, %v729_v27 }
 0x247   : > { %v731_v29 = vsub.f32 %v725_v26, %v730_v28  ;;  %832 = vst.msk [vmem:[#allocation3] sm:$0xff] %vm490_vm4, %v730_v28  ;;  %736 = vperm.xlu0 %1271, %v730_v28  }
 0x249   : > { %v732_v37 = vmul.f32 1.442695, %v731_v29 }
 0x2c2   : > { %v737_v32 = vpop.permute.xlu0 %736 }
 0x2c3   : > { %v739_v33 = vsub.f32 %v721_v22, %v737_v32 }
 0x2c5   : > { %v740_v34 = vmul.f32 1.442695, %v739_v33 }
 0x2c7   : > { %1273 = vpow2.f32 %v740_v34 }
 0x2c8   : > { %1275 = vpow2.f32 %v732_v37 }
 0x2d4   : > { %v1274_v35 = vpop.eup %1273 }
 0x2d5   : > { %1188 = vmatmul.mubr.msk.f32.vlgmr.msra.gmra.mxu1 %vm726_vm5, %v1274_v35  ;;  %v744_v36 = vsel %vm726_vm5, %v1274_v35, 0.0  ;;  %v1276_v38 = vpop.eup %1275 }
 0x2d6   : > { %745 = vadd.xlane.f32.xlu1 %v744_v36  ;;  %v743_v40 = vmul.f32 %v1276_v38, %v742_v39 }
 0x35f   : > { %v746_v41 = vpop.xlane.xlu1 %745 }
 0x360   : > { %v747_v42 = vadd.f32 %v746_v41, %v743_v40 }
 0x362   : > { %749 = vst.msk [vmem:[#allocation4] sm:$0xff] %vm490_vm4, %v747_v42 }
 0x369   : > { %v837_v43 = vld [vmem:[#allocation4] sm:$0xff] }
 0x36a   : > { %840 = vperm.xlu1 %1272, %v837_v43  }
 0x36e   : > { %753 = vperm.xlu1 %1272, %v1276_v38  }
 0x395   : > { %v826_v45 = vpop.f32.mrf.mxu1 }
 0x397   : > { %v1189_v46 = vpop.f32.mrf.mxu1 }
 0x3e5   : > { %v841_v47 = vpop.permute.xlu1 %840 }
 0x3e6   : > { %1277 = vrcp.f32 %v841_v47 }
 0x3e9   : > { %v754_v49 = vpop.permute.xlu1 %753 }
 0x3ea   : > { %v756_v50 = vmul.f32 %v754_v49, %v750_v48 }
 0x3ec   : > { %v830_v51 = vadd.f32 %v826_v45, %v756_v50 }
 0x3ee   : > { %831 = vst.msk [vmem:[#allocation5] sm:$0xff] %vm488_vm3, %v830_v51 }
 0x3f3   : > { %v1278_v52 = vpop.eup %1277 }
 0x3f5   : > { %v836_v53 = vld [vmem:[#allocation5] sm:$0xff] }
 0x3f6   : > { %v844_v54 = vmul.f32 %v1278_v52, %v836_v53 }
 0x3f8   : > { %1193 = vmatmul.mubr.msk.f32.vlgmr.msra.gmra.mxu0 %vm488_vm3, %v844_v54 }
 0x4b7   : > { %930 = sbr.rel (!%p926_p1) target bundleno = 1222 (0x4c6), region = 64 }
 0x4b8   : > { %v920_v56 = vpop.f32.mrf.mxu0 }
 0x4b9   : > { %v924_v57 = vadd.f32 %v920_v56, %v845_v55 }
 0x4ba   : > { %v1194_v58 = vpop.f32.mrf.mxu0 }
 0x4bb   : > { %925 = vst.msk [vmem:[#allocation6] sm:$0xff] %vm414_vm2, %v924_v57 }
 0x4c2   : > { %v931_v59 = vld [vmem:[#allocation6] sm:$0xff] }
 0x4c3   : > { %v939_v61 = vadd.f32 %v1116_v60, %v931_v59 }
 0x4c5   : > { %940 = vst.msk [vmem:[%s367_s21] sm:$0xff] %vm414_vm2, %v939_v61 }
 0x4c6 PF: > { %s1118_s26 = sshll.u32 %s1359_s28, 7  ;;  %s955_s11 = sshll.u32 %s367_s21, 4  ;;  %s956_s11 = int_to_ptr.vmem [resolvable:$true] %s955_s11 }
 0x4c7   : > { %s953_s30 = scalar_lea.hbm %s1646_s7, %s1118_s26  ;;  %s1666_s12 = sand.u32 1, %s1347_s25  }
 0x4c8   : > { %s942_s14 = scalar_lea.sflag [#allocation8], %s1666_s12  ;;  %s1279_s17 = scalar_lea.vmem %s956_s11, 128 }
 0x4c9   : > { %p1280_p2 = scmp.ne.s32.totalorder %s956_s11, %s1279_s17  ;;  %s1378_s18 = smov [#allocation7]  }
 0x4ca   : > { %s1283_s10 = sshll.u32 %s1378_s18, 4  ;;  %s1284_s10 = int_to_ptr.vmem [resolvable:$false] %s1283_s10 }
 0x4cb   : > { %p1281_p4 = pnand %p1280_p2, %p1468_p3  ;;  %s1285_s16 = scalar_lea.vmem %s1284_s10, 256 }
 0x4cc   : > { %p1286_p6 = scmp.lt.s32.totalorder %s956_s11, %s1284_s10  ;;  %p1287_p7 = scmp.lt.s32.totalorder %s1285_s16, %s1279_s17 }
 0x4cd   : > { %p1282_p5 = pneg %p1281_p4 }
 0x4ce   : > { %p1288_p8 = por %p1287_p7, %p1286_p6 }
 0x4d0   : > { %p1289_p10 = pnand %p1288_p8, %p1282_p5 }
 0x4d2   : > { %1292 = shalt.err (!%p1289_p10)
}
 0x4d3   : > { %s1293_s28 = scalar_lea.hbm %s953_s30, 128  ;;  %s1297_s23 = scalar_lea.hbm %s1646_s7, 256 }
 0x4d4   : > { %p1294_p11 = scmp.ne.s32.totalorder %s953_s30, %s1293_s28  ;;  %p1298_p0 = scmp.lt.s32.totalorder %s953_s30, %s1646_s7 }
 0x4d5   : > { %p1299_p1 = scmp.lt.s32.totalorder %s1297_s23, %s1293_s28 }
 0x4d6   : > { %p1295_p12 = pnand %p1294_p11, %p1468_p3 }
 0x4d7   : > { %p1300_p2 = por %p1299_p1, %p1298_p0 }
 0x4d8   : > { %p1296_p13 = pneg %p1295_p12 }
 0x4da   : > { %p1301_p4 = pnand %p1300_p2, %p1296_p13 }
 0x4dc   : > { %1304 = shalt.err (!%p1301_p4)
}
 0x4dd   : > { %1195 = dma.vmem_to_hbm [thread:$0]  (%p1468_p3), %s956_s11, 128, %s953_s30, %s942_s14  }
 0x4de PF: > { %s1667_s22 = sld [smem:[#allocation10_spill]]  ;;  %p1201_p5 = scmp.ge.s32.totalorder %s1371_s8, 2 }
 0x4e0   : > { %p1198_p6 = pnand %p1201_p5, %p1478_p9 }
 0x4e2   : > { %p1199_p7 = pneg %p1198_p6 }
 0x4e4   : > { %s967_s0 = sand.u32 1, %s1667_s22  }
 0x4e5   : > { %s968_s24 = scalar_lea.sflag [#allocation8], %s967_s0 }
 0x4e6   : > { %1338 = dma.done.wait (%p1199_p7), %s968_s24, 128  }
 0x4e7   : > { %1340 = vsyncadd (%p1199_p7), %s968_s24, 4294967168  ;;  %s20_s8 = sadd.s32 1, %s1371_s8   ;;  %s1669_s26 = sld [smem:[#allocation11_spill]] }
 0x4e8   : > { %p17_p8 = scmp.ge.s32.totalorder %s20_s8, 18   ;;  %s1670_s27 = sld [smem:[#allocation17_spill]] }
 0x4e9   : > { %s1671_s13 = sld [smem:[#allocation12_spill]]  ;;  %s1675_s24 = smov %s1347_s25 }
 0x4ea   : > { %s1672_s28 = sld [smem:[#allocation13_spill]] }
 0x4eb   : > { %s1673_s29 = sld [smem:[#allocation14_spill]]  ;;  %19 = sbr.rel (!%p17_p8) target bundleno = 7 (0x7), region = 114 }
 0x4ec   : > { %s1674_s30 = sld [smem:[#allocation15_spill]] }
 0x4ed   : > { %s1676_s25 = smov %s1669_s26 }
 0x4ee   : > { %s1677_s26 = smov %s1670_s27 }
 0x4ef   : > { %s1678_s27 = smov %s1671_s13 }
 0x4f0   :  { %973 = vsyncpa [#allocation8], 1 }
 0x4f1   :  { %975 = vsyncpa [#allocation8 + $0x1], 1 }

</bundles_post_ra>
